<compile_context>
chip_gen: v6e
topology: v6e:2x2x1
jax: 0.10.0
libtpu: 0.0.40
codegen_flags: <defaults>
</compile_context>

<pallas_src>
import jax
import jax.numpy as jnp
from jax.experimental import pallas as pl
from jax.experimental.pallas import tpu as pltpu


def _embed_gather_kernel(ids_ref, table_ref, out_ref, scratch_ref, sem_ref):
    """One grid step gathers T embedding rows via per-row DMA (double-buffered).

    ids_ref     : (Np,)  int32, SMEM (scalar prefetch) — flattened token ids
    table_ref   : (V, Dp) f32,  HBM (memory_space=pl.ANY) — embedding table
    out_ref     : (T, Dp) f32,  VMEM output block
    scratch_ref : (2, T, Dp) f32, VMEM double buffer
    sem_ref     : (2,) DMA semaphores (one per buffer slot)
    """
    T = out_ref.shape[0]
    o = pl.program_id(0)               # "parallel" chunk (megacore shardable)
    i = pl.program_id(1)               # "arbitrary" tile within the chunk
    n_inner = pl.num_programs(1)
    tile = o * n_inner + i
    slot = i % 2

    def start_fetch(tile_idx, slot_idx):
        base = tile_idx * T

        @pl.loop(0, T)
        def _(t):
            row = ids_ref[base + t]
            pltpu.make_async_copy(
                table_ref.at[row],             # (Dp,) row in HBM
                scratch_ref.at[slot_idx, t],   # (Dp,) row in VMEM scratch
                sem_ref.at[slot_idx],
            ).start()

    # First tile of this chunk: nothing was prefetched yet -> fetch it now.
    @pl.when(i == 0)
    def _():
        start_fetch(tile, slot)

    # Prefetch the next tile into the other buffer BEFORE waiting on this one.
    @pl.when(i + 1 < n_inner)
    def _():
        start_fetch(tile + 1, 1 - slot)

    # Wait for the T row copies of the current tile (same-shaped dummy desc,
    # one wait per issued copy — standard paged-attention wait pattern).
    @pl.loop(0, T)
    def _(t):
        pltpu.make_async_copy(
            table_ref.at[0],
            scratch_ref.at[slot, 0],
            sem_ref.at[slot],
        ).wait()

    out_ref[...] = scratch_ref[slot]


def token_embeddings(x, table, *, token_tile=256):
    """x: (B, S) integer token ids; table: (V, D) float32. Returns (B, S, D)."""
    B, S = x.shape
    V, D = table.shape
    N = B * S

    # Lane-dense embedding dim: pad D up to a multiple of 128 so row DMAs and
    # output stores are full-lane (unmasked vst).
    Dp = ((D + 127) // 128) * 128
    table_p = table if Dp == D else jnp.pad(table, ((0, 0), (0, Dp - D)))

    # PyTorch nn.Embedding raises on out-of-range ids; we clamp instead so the
    # row DMAs can never address out of bounds.
    ids = jnp.clip(x.reshape(N).astype(jnp.int32), 0, V - 1)

    # Pad the flattened token count to a whole number of tiles (and an even
    # number of tiles when possible so the outer "parallel" axis can shard
    # across v7x's two TensorCores).  Padded ids point at row 0 (harmless;
    # the padded output rows are sliced off below).
    n_tiles = -(-N // token_tile)
    n_par = 2 if n_tiles >= 2 else 1
    n_tiles = -(-n_tiles // n_par) * n_par
    n_inner = n_tiles // n_par
    Np = n_tiles * token_tile
    if Np != N:
        ids = jnp.pad(ids, (0, Np - N))
    # TODO(synk): for very large N, chunk the id array — a single (Np,) SMEM
    # scalar-prefetch buffer does not scale to millions of tokens.

    out_flat = pl.pallas_call(
        _embed_gather_kernel,
        out_shape=jax.ShapeDtypeStruct((Np, Dp), table.dtype),
        grid_spec=pltpu.PrefetchScalarGridSpec(
            num_scalar_prefetch=1,                        # ids -> SMEM
            grid=(n_par, n_inner),
            in_specs=[pl.BlockSpec(memory_space=pl.ANY)],  # table stays in HBM
            out_specs=pl.BlockSpec(
                (token_tile, Dp),
                lambda o, i, ids_ref: (o * n_inner + i, 0),
            ),
            scratch_shapes=[
                pltpu.VMEM((2, token_tile, Dp), table.dtype),
                pltpu.SemaphoreType.DMA((2,)),
            ],
        ),
        compiler_params=pltpu.CompilerParams(
            dimension_semantics=("parallel", "arbitrary"),
        ),
    )(ids, table_p)

    return out_flat[:N, :D].reshape(B, S, D)


if __name__ == "__main__":
    d_model = 32
    vocab_size = 32
    batch, seq = 2, 8

    key = jax.random.PRNGKey(0)
    k_tab, k_ids = jax.random.split(key)

    # nn.Embedding default init: weight ~ N(0, 1)
    table = jax.random.normal(k_tab, (vocab_size, d_model), dtype=jnp.float32)
    x = jax.random.randint(k_ids, (batch, seq), 0, vocab_size, dtype=jnp.int32)

    out = token_embeddings(x, table)
    out = jax.block_until_ready(out)

    # Correctness check: plain JAX gather == PyTorch nn.Embedding forward.
    ref = table[x]
    assert out.shape == (batch, seq, d_model)
    assert jnp.array_equal(out, ref), "mismatch vs reference gather"

    print("KERNEL_OK")
</pallas_src>

<mosaic_0001>
module attributes {stable_mosaic.version = 11 : i64} {
  func.func @_embed_gather_kernel(%arg0: i32, %arg1: i32, %arg2: memref<256xi32, #tpu.memory_space<smem>>, %arg3: memref<32x128xf32, #tpu.memory_space<any>>, %arg4: memref<256x128xf32, #tpu.memory_space<vmem>>, %arg5: memref<2x256x128xf32, #tpu.memory_space<vmem>>, %arg6: memref<2x!tpu.dma_semaphore, #tpu.memory_space<semaphore_mem>>) attributes {dimension_semantics = [#tpu.dimension_semantics<parallel>, #tpu.dimension_semantics<arbitrary>], iteration_bounds = array<i64: 1, 1>, scalar_prefetch = 1 : i64, scratch_operands = 2 : i64, tpu.core_type = #tpu.core_type<tc>, window_params = [{}, {transform_indices = @transform_1, window_bounds = array<i64: 256, 128>}]} {
    %c1_i32 = arith.constant 1 : i32
    %0 = arith.muli %arg0, %c1_i32 : i32
    %1 = arith.addi %0, %arg1 : i32
    %c2_i32 = arith.constant 2 : i32
    %c0_i32 = arith.constant 0 : i32
    %2 = arith.cmpi eq, %c2_i32, %c0_i32 : i32
    %c1_i32_0 = arith.constant 1 : i32
    %3 = arith.select %2, %c1_i32_0, %c2_i32 : i32
    %4 = arith.remsi %arg1, %3 : i32
    %c0_i32_1 = arith.constant 0 : i32
    %5 = arith.cmpi ne, %4, %c0_i32_1 : i32
    %c0_i32_2 = arith.constant 0 : i32
    %6 = arith.cmpi slt, %4, %c0_i32_2 : i32
    %c0_i32_3 = arith.constant 0 : i32
    %7 = arith.cmpi slt, %3, %c0_i32_3 : i32
    %8 = arith.xori %6, %7 : i1
    %9 = arith.andi %8, %5 : i1
    %10 = arith.addi %4, %3 : i32
    %11 = arith.select %9, %10, %4 : i32
    %c0_i32_4 = arith.constant 0 : i32
    %12 = arith.cmpi eq, %arg1, %c0_i32_4 : i32
    %13 = arith.extui %12 : i1 to i32
    %c0_i32_5 = arith.constant 0 : i32
    %14 = arith.cmpi ne, %13, %c0_i32_5 : i32
    scf.if %14 {
      %c256_i32_14 = arith.constant 256 : i32
      %24 = arith.muli %1, %c256_i32_14 : i32
      %c0_i32_15 = arith.constant 0 : i32
      %c256_i32_16 = arith.constant 256 : i32
      %25 = arith.addi %c0_i32_15, %c256_i32_16 : i32
      %c1_i32_17 = arith.constant 1 : i32
      scf.for %arg7 = %c0_i32_15 to %25 step %c1_i32_17  : i32 {
        %c1_i32_19 = arith.constant 1 : i32
        %26 = arith.muli %arg7, %c1_i32_19 : i32
        %c0_i32_20 = arith.constant 0 : i32
        %27 = arith.addi %c0_i32_20, %26 : i32
        %28 = arith.addi %24, %27 : i32
        %29 = arith.index_cast %28 : i32 to index
        %30 = memref.load %arg2[%29] : memref<256xi32, #tpu.memory_space<smem>>
        %c0_i32_21 = arith.constant 0 : i32
        %31 = tpu.memref_slice %arg3[%30, %c0_i32_21] : memref<32x128xf32, #tpu.memory_space<any>> -> memref<1x128xf32, #tpu.memory_space<any>>
        %32 = tpu.memref_squeeze %31 : memref<1x128xf32, #tpu.memory_space<any>> -> memref<128xf32, #tpu.memory_space<any>>
        %c0_i32_22 = arith.constant 0 : i32
        %33 = tpu.memref_slice %arg5[%11, %27, %c0_i32_22] : memref<2x256x128xf32, #tpu.memory_space<vmem>> -> memref<1x1x128xf32, #tpu.memory_space<vmem>>
        %34 = tpu.memref_squeeze %33 : memref<1x1x128xf32, #tpu.memory_space<vmem>> -> memref<128xf32, #tpu.memory_space<vmem>>
        %35 = tpu.memref_slice %arg6[%11] : memref<2x!tpu.dma_semaphore, #tpu.memory_space<semaphore_mem>> -> memref<1x!tpu.dma_semaphore, #tpu.memory_space<semaphore_mem>>
        %36 = tpu.memref_squeeze %35 : memref<1x!tpu.dma_semaphore, #tpu.memory_space<semaphore_mem>> -> memref<!tpu.dma_semaphore, #tpu.memory_space<semaphore_mem>>
        tpu.enqueue_dma source(%32 : memref<128xf32, #tpu.memory_space<any>>) target(%34 : memref<128xf32, #tpu.memory_space<vmem>>) target_semaphore(%36 : memref<!tpu.dma_semaphore, #tpu.memory_space<semaphore_mem>>)
      }
      %c256_i32_18 = arith.constant 256 : i32
    } else {
    }
    %c1_i32_6 = arith.constant 1 : i32
    %15 = arith.addi %arg1, %c1_i32_6 : i32
    %c1_i32_7 = arith.constant 1 : i32
    %16 = arith.cmpi slt, %15, %c1_i32_7 : i32
    %17 = arith.extui %16 : i1 to i32
    %c0_i32_8 = arith.constant 0 : i32
    %18 = arith.cmpi ne, %17, %c0_i32_8 : i32
    scf.if %18 {
      %c1_i32_14 = arith.constant 1 : i32
      %24 = arith.addi %1, %c1_i32_14 : i32
      %c1_i32_15 = arith.constant 1 : i32
      %25 = arith.subi %c1_i32_15, %11 : i32
      %c256_i32_16 = arith.constant 256 : i32
      %26 = arith.muli %24, %c256_i32_16 : i32
      %c0_i32_17 = arith.constant 0 : i32
      %c256_i32_18 = arith.constant 256 : i32
      %27 = arith.addi %c0_i32_17, %c256_i32_18 : i32
      %c1_i32_19 = arith.constant 1 : i32
      scf.for %arg7 = %c0_i32_17 to %27 step %c1_i32_19  : i32 {
        %c1_i32_21 = arith.constant 1 : i32
        %28 = arith.muli %arg7, %c1_i32_21 : i32
        %c0_i32_22 = arith.constant 0 : i32
        %29 = arith.addi %c0_i32_22, %28 : i32
        %30 = arith.addi %26, %29 : i32
        %31 = arith.index_cast %30 : i32 to index
        %32 = memref.load %arg2[%31] : memref<256xi32, #tpu.memory_space<smem>>
        %c0_i32_23 = arith.constant 0 : i32
        %33 = tpu.memref_slice %arg3[%32, %c0_i32_23] : memref<32x128xf32, #tpu.memory_space<any>> -> memref<1x128xf32, #tpu.memory_space<any>>
        %34 = tpu.memref_squeeze %33 : memref<1x128xf32, #tpu.memory_space<any>> -> memref<128xf32, #tpu.memory_space<any>>
        %c0_i32_24 = arith.constant 0 : i32
        %35 = tpu.memref_slice %arg5[%25, %29, %c0_i32_24] : memref<2x256x128xf32, #tpu.memory_space<vmem>> -> memref<1x1x128xf32, #tpu.memory_space<vmem>>
        %36 = tpu.memref_squeeze %35 : memref<1x1x128xf32, #tpu.memory_space<vmem>> -> memref<128xf32, #tpu.memory_space<vmem>>
        %37 = tpu.memref_slice %arg6[%25] : memref<2x!tpu.dma_semaphore, #tpu.memory_space<semaphore_mem>> -> memref<1x!tpu.dma_semaphore, #tpu.memory_space<semaphore_mem>>
        %38 = tpu.memref_squeeze %37 : memref<1x!tpu.dma_semaphore, #tpu.memory_space<semaphore_mem>> -> memref<!tpu.dma_semaphore, #tpu.memory_space<semaphore_mem>>
        tpu.enqueue_dma source(%34 : memref<128xf32, #tpu.memory_space<any>>) target(%36 : memref<128xf32, #tpu.memory_space<vmem>>) target_semaphore(%38 : memref<!tpu.dma_semaphore, #tpu.memory_space<semaphore_mem>>)
      }
      %c256_i32_20 = arith.constant 256 : i32
    } else {
    }
    %c0_i32_9 = arith.constant 0 : i32
    %c256_i32 = arith.constant 256 : i32
    %19 = arith.addi %c0_i32_9, %c256_i32 : i32
    %c1_i32_10 = arith.constant 1 : i32
    scf.for %arg7 = %c0_i32_9 to %19 step %c1_i32_10  : i32 {
      %c0_i32_14 = arith.constant 0 : i32
      %c0_i32_15 = arith.constant 0 : i32
      %c0_i32_16 = arith.constant 0 : i32
      %24 = tpu.memref_slice %arg3[%c0_i32_14, %c0_i32_16] : memref<32x128xf32, #tpu.memory_space<any>> -> memref<1x128xf32, #tpu.memory_space<any>>
      %25 = tpu.memref_squeeze %24 : memref<1x128xf32, #tpu.memory_space<any>> -> memref<128xf32, #tpu.memory_space<any>>
      %c0_i32_17 = arith.constant 0 : i32
      %26 = tpu.memref_slice %arg5[%11, %c0_i32_15, %c0_i32_17] : memref<2x256x128xf32, #tpu.memory_space<vmem>> -> memref<1x1x128xf32, #tpu.memory_space<vmem>>
      %27 = tpu.memref_squeeze %26 : memref<1x1x128xf32, #tpu.memory_space<vmem>> -> memref<128xf32, #tpu.memory_space<vmem>>
      %28 = tpu.memref_slice %arg6[%11] : memref<2x!tpu.dma_semaphore, #tpu.memory_space<semaphore_mem>> -> memref<1x!tpu.dma_semaphore, #tpu.memory_space<semaphore_mem>>
      %29 = tpu.memref_squeeze %28 : memref<1x!tpu.dma_semaphore, #tpu.memory_space<semaphore_mem>> -> memref<!tpu.dma_semaphore, #tpu.memory_space<semaphore_mem>>
      tpu.wait_dma2 semaphore(%29 : memref<!tpu.dma_semaphore, #tpu.memory_space<semaphore_mem>>) src(%25 : memref<128xf32, #tpu.memory_space<any>>) dst(%27 : memref<128xf32, #tpu.memory_space<vmem>>)
    }
    %20 = arith.index_cast %11 : i32 to index
    %c0 = arith.constant 0 : index
    %c0_11 = arith.constant 0 : index
    %21 = vector.load %arg5[%20, %c0, %c0_11] : memref<2x256x128xf32, #tpu.memory_space<vmem>>, vector<1x256x128xf32>
    %22 = vector.shape_cast %21 : vector<1x256x128xf32> to vector<256x128xf32>
    %c0_12 = arith.constant 0 : index
    %c0_13 = arith.constant 0 : index
    %23 = vector.load %arg4[%c0_12, %c0_13] : memref<256x128xf32, #tpu.memory_space<vmem>>, vector<256x128xf32>
    tpu.vector_store %arg4[%c0_12, %c0_13], %22 {strides = array<i32>} : memref<256x128xf32, #tpu.memory_space<vmem>>, vector<256x128xf32>,
    return
  }
  func.func @transform_1(%arg0: i32, %arg1: i32, %arg2: memref<256xi32, #tpu.memory_space<smem>>) -> (i32, i32) {
    %c1_i32 = arith.constant 1 : i32
    %0 = arith.muli %arg0, %c1_i32 : i32
    %1 = arith.addi %0, %arg1 : i32
    %c0_i32 = arith.constant 0 : i32
    %c0_i32_0 = arith.constant 0 : i32
    return %1, %c0_i32 : i32, i32
  }
}

</mosaic_0001>

<bundles_post_ra>
// kernel: tpu_custom_call.1
= control target key start
LH: loop header
LB: loop body
LE: loop exit
PB: predicated region body
PF: predicated region fallthrough
CT: control target
= control target key end

     0   :  { %s323_s9 = smov [#allocation5]   ;;  %s368_s0 = inlined_call_operand.hbm [shape: s32[256], index: 0, kind: input, shape index: {}]   ;;  %s369_s1 = inlined_call_operand.hbm [shape: f32[32,128], index: 1, kind: input, shape index: {}]   ;;  %s370_s2 = inlined_call_operand.hbm [shape: f32[256,128], index: 2, kind: output, shape index: {}]  }
   0x1   :  { %8 = dma.hbm_to_smem %s368_s0, 32, %s323_s9, [#allocation4] }
   0x2   :  { %309 = dma.done.wait [#allocation4], 32 }
   0x3   :  { %310 = vsyncadd [#allocation4], 4294967264 }
   0x4   :  { %10 = sfence }
   0x5   :  { %11 = vsyncpa [#allocation7], 0  ;;  %s346_s12 = smov 0  }
   0x6 LB: > { %s35_s13 = sld [smem:[#allocation5 + %s317_s12]]  ;;  %s40_s14 = scalar_lea.vmem [#allocation2], %s317_s12  ;;  %s317_s12 = sphi %s346_s12, %s33_s12  }
   0x7   : > { %s49_s15 = sshll.u32 %s40_s14, 4  ;;  %s261_s22 = scalar_lea.hbm %s369_s1, 512  ;;  %s50_s15 = int_to_ptr.vmem [resolvable:$true] %s49_s15 }
   0xc   : > { %s224_s16 = sshll.u32 %s35_s13, 4 }
   0xd   : > { %s37_s18 = scalar_lea.hbm %s369_s1, %s224_s16 }
   0xe   : > { %s259_s19 = scalar_lea.hbm %s37_s18, 16  ;;  %p262_p1 = scmp.lt.s32.totalorder %s37_s18, %s369_s1 }
   0xf   : > { %p260_p0 = scmp.ne.s32.totalorder %s37_s18, %s259_s19  ;;  %p263_p2 = scmp.lt.s32.totalorder %s261_s22, %s259_s19 }
  0x11   : > { %p264_p3 = por %p263_p2, %p262_p1 }
  0x13   : > { %p265_p4 = pnand %p264_p3, %p260_p0 }
  0x15   : > { %268 = shalt.err (!%p265_p4)  }
  0x16   : > { %s269_s25 = scalar_lea.vmem %s50_s15, 16  ;;  %s324_s26 = smov [#allocation2]  }
  0x17   : > { %p270_p5 = scmp.ne.s32.totalorder %s50_s15, %s269_s25  ;;  %s271_s27 = sshll.u32 %s324_s26, 4  ;;  %s272_s27 = int_to_ptr.vmem [resolvable:$false] %s271_s27 }
  0x18   : > { %s273_s28 = scalar_lea.vmem %s272_s27, 8192  ;;  %p274_p6 = scmp.lt.s32.totalorder %s50_s15, %s272_s27 }
  0x19   : > { %p275_p7 = scmp.lt.s32.totalorder %s273_s28, %s269_s25 }
  0x1b   : > { %p276_p8 = por %p275_p7, %p274_p6 }
  0x1d   : > { %p277_p9 = pnand %p276_p8, %p270_p5 }
  0x1f   : > { %280 = shalt.err (!%p277_p9)  }
  0x20   : > { %52 = dma.hbm_to_vmem [thread:$0]  %s37_s18, 16, %s50_s15, [#allocation3] }
  0x21   : > { %s33_s12 = sadd.s32 1, %s317_s12  }
  0x22   : > { %p30_p10 = scmp.ge.s32.totalorder %s33_s12, 256  }
  0x23   :  { %s319_s29 = smov (%p30_p10), 0  }
  0x24   :  { %32 = sbr.rel (!%p30_p10) target bundleno = 6 (0x6), region = 67 }
  0x29 LB: > { %311 = dma.done.wait [#allocation3], 16  ;;  %s321_s29 = sphi %s319_s29, %s91_s29  }
  0x2a   : > { %312 = vsyncadd [#allocation3], 4294967280  ;;  %s91_s29 = sadd.s32 1, %s321_s29  }
  0x2b   : > { %p88_p11 = scmp.ge.s32.totalorder %s91_s29, 256  }
  0x2c   :  { %v97_v0 = vld [vmem:[#allocation2] sm:$0xff] (%p88_p11)  ;;  %v98_v1 = vld [vmem:[#allocation2 + $0x8] sm:$0xff] (%p88_p11)  ;;  %v99_v2 = vld [vmem:[#allocation2 + $0x10] sm:$0xff] (%p88_p11)  ;;  %s325_s1 = smov (%p88_p11), [#allocation6]  }
  0x2d   :  { %90 = sbr.rel (!%p88_p11) target bundleno = 41 (0x29), region = 89  ;;  %129 = vst [vmem:[#allocation6] sm:$0xff] (%p88_p11), %v97_v0  ;;  %130 = vst [vmem:[#allocation6 + $0x8] sm:$0xff] (%p88_p11), %v98_v1  ;;  %v100_v3 = vld [vmem:[#allocation2 + $0x18] sm:$0xff] (%p88_p11)  ;;  %v101_v4 = vld [vmem:[#allocation2 + $0x20] sm:$0xff] (%p88_p11)  ;;  %s170_s30 = sshll.u32 (%p88_p11), %s325_s1, 4  ;;  %s171_s30 = int_to_ptr.vmem [resolvable:$true] %s170_s30 }
  0x2e   :  { %131 = vst [vmem:[#allocation6 + $0x10] sm:$0xff] (%p88_p11), %v99_v2  ;;  %v102_v5 = vld [vmem:[#allocation2 + $0x28] sm:$0xff] (%p88_p11)  ;;  %132 = vst [vmem:[#allocation6 + $0x18] sm:$0xff] (%p88_p11), %v100_v3  ;;  %v103_v6 = vld [vmem:[#allocation2 + $0x30] sm:$0xff] (%p88_p11)  ;;  %s281_s3 = scalar_lea.vmem (%p88_p11), %s171_s30, 4096  ;;  %p286_p13 = scmp.lt.s32.totalorder (%p88_p11), %s171_s30, %s171_s30 }
  0x2f   :  { %133 = vst [vmem:[#allocation6 + $0x20] sm:$0xff] (%p88_p11), %v101_v4  ;;  %134 = vst [vmem:[#allocation6 + $0x28] sm:$0xff] (%p88_p11), %v102_v5  ;;  %v104_v7 = vld [vmem:[#allocation2 + $0x38] sm:$0xff] (%p88_p11)  ;;  %v105_v8 = vld [vmem:[#allocation2 + $0x40] sm:$0xff] (%p88_p11)  ;;  %p282_p12 = scmp.ne.s32.totalorder (%p88_p11), %s171_s30, %s281_s3  ;;  %p287_p0 = scmp.lt.s32.totalorder (%p88_p11), %s281_s3, %s281_s3 }
  0x30   :  { %135 = vst [vmem:[#allocation6 + $0x30] sm:$0xff] (%p88_p11), %v103_v6  ;;  %136 = vst [vmem:[#allocation6 + $0x38] sm:$0xff] (%p88_p11), %v104_v7  ;;  %v106_v9 = vld [vmem:[#allocation2 + $0x48] sm:$0xff] (%p88_p11)  ;;  %v107_v10 = vld [vmem:[#allocation2 + $0x50] sm:$0xff] (%p88_p11) }
  0x31   :  { %137 = vst [vmem:[#allocation6 + $0x40] sm:$0xff] (%p88_p11), %v105_v8  ;;  %v108_v11 = vld [vmem:[#allocation2 + $0x58] sm:$0xff] (%p88_p11)  ;;  %138 = vst [vmem:[#allocation6 + $0x48] sm:$0xff] (%p88_p11), %v106_v9  ;;  %v109_v12 = vld [vmem:[#allocation2 + $0x60] sm:$0xff] (%p88_p11)  ;;  %p288_p1 = por (%p88_p11), %p287_p0, %p286_p13 }
  0x32   :  { %139 = vst [vmem:[#allocation6 + $0x50] sm:$0xff] %v107_v10  ;;  %140 = vst [vmem:[#allocation6 + $0x58] sm:$0xff] %v108_v11  ;;  %v110_v13 = vld [vmem:[#allocation2 + $0x68] sm:$0xff]  ;;  %v111_v14 = vld [vmem:[#allocation2 + $0x70] sm:$0xff] }
  0x33   :  { %141 = vst [vmem:[#allocation6 + $0x60] sm:$0xff] %v109_v12  ;;  %142 = vst [vmem:[#allocation6 + $0x68] sm:$0xff] %v110_v13  ;;  %v112_v15 = vld [vmem:[#allocation2 + $0x78] sm:$0xff]  ;;  %v113_v16 = vld [vmem:[#allocation2 + $0x80] sm:$0xff]  ;;  %p289_p2 = pnand %p288_p1, %p282_p12 }
  0x34   :  { %143 = vst [vmem:[#allocation6 + $0x70] sm:$0xff] %v111_v14  ;;  %v114_v17 = vld [vmem:[#allocation2 + $0x88] sm:$0xff]  ;;  %144 = vst [vmem:[#allocation6 + $0x78] sm:$0xff] %v112_v15  ;;  %v115_v18 = vld [vmem:[#allocation2 + $0x90] sm:$0xff] }
  0x35   :  { %145 = vst [vmem:[#allocation6 + $0x80] sm:$0xff] %v113_v16  ;;  %146 = vst [vmem:[#allocation6 + $0x88] sm:$0xff] %v114_v17  ;;  %v116_v19 = vld [vmem:[#allocation2 + $0x98] sm:$0xff]  ;;  %v117_v20 = vld [vmem:[#allocation2 + $0xa0] sm:$0xff] }
  0x36   :  { %147 = vst [vmem:[#allocation6 + $0x90] sm:$0xff] %v115_v18  ;;  %148 = vst [vmem:[#allocation6 + $0x98] sm:$0xff] %v116_v19  ;;  %v118_v21 = vld [vmem:[#allocation2 + $0xa8] sm:$0xff]  ;;  %v119_v22 = vld [vmem:[#allocation2 + $0xb0] sm:$0xff] }
  0x37   :  { %149 = vst [vmem:[#allocation6 + $0xa0] sm:$0xff] %v117_v20  ;;  %v120_v23 = vld [vmem:[#allocation2 + $0xb8] sm:$0xff]  ;;  %150 = vst [vmem:[#allocation6 + $0xa8] sm:$0xff] %v118_v21  ;;  %v121_v24 = vld [vmem:[#allocation2 + $0xc0] sm:$0xff] }
  0x38   :  { %151 = vst [vmem:[#allocation6 + $0xb0] sm:$0xff] %v119_v22  ;;  %152 = vst [vmem:[#allocation6 + $0xb8] sm:$0xff] %v120_v23  ;;  %v122_v25 = vld [vmem:[#allocation2 + $0xc8] sm:$0xff]  ;;  %v123_v26 = vld [vmem:[#allocation2 + $0xd0] sm:$0xff] }
  0x39   :  { %153 = vst [vmem:[#allocation6 + $0xc0] sm:$0xff] %v121_v24  ;;  %154 = vst [vmem:[#allocation6 + $0xc8] sm:$0xff] %v122_v25  ;;  %v124_v27 = vld [vmem:[#allocation2 + $0xd8] sm:$0xff]  ;;  %v125_v28 = vld [vmem:[#allocation2 + $0xe0] sm:$0xff] }
  0x3a   :  { %155 = vst [vmem:[#allocation6 + $0xd0] sm:$0xff] %v123_v26  ;;  %v126_v29 = vld [vmem:[#allocation2 + $0xe8] sm:$0xff]  ;;  %156 = vst [vmem:[#allocation6 + $0xd8] sm:$0xff] %v124_v27  ;;  %v127_v30 = vld [vmem:[#allocation2 + $0xf0] sm:$0xff] }
  0x3b   :  { %157 = vst [vmem:[#allocation6 + $0xe0] sm:$0xff] %v125_v28  ;;  %158 = vst [vmem:[#allocation6 + $0xe8] sm:$0xff] %v126_v29  ;;  %v128_v31 = vld [vmem:[#allocation2 + $0xf8] sm:$0xff] }
  0x3c   :  { %159 = vst [vmem:[#allocation6 + $0xf0] sm:$0xff] %v127_v30  ;;  %160 = vst [vmem:[#allocation6 + $0xf8] sm:$0xff] %v128_v31 }
  0x3d   :  { %292 = shalt.err (!%p289_p2)
}
  0x3e   :  { %s326_s4 = smov 128   ;;  %s327_s5 = smov 8  }
  0x3f   :  { %176 = dma.vmem_to_hbm [thread:$0]  %s171_s30, 4096, %s370_s2, [#allocation7], %s326_s4, %s326_s4, %s327_s5  }
  0x40   :  { %313 = dma.done.wait [#allocation7], 4096  }
  0x41   :  { %314 = vsyncadd [#allocation7], 4294963200 }
  0x42   :  { %180 = vsyncpa [#allocation7], 1 }
  0x43   :  { %181 = vsyncmov [#allocation3] }
  0x46   :  { %s182_s8 = vpop.sfrf %181 }
  0x47   :  { %p227_p3 = scmp.ne.s32.totalorder %s182_s8, 0 }
  0x49   :  { %186 = shalt.err (%p227_p3)  }
  0x4a   :  { %188 = vsyncmov [#allocation3 + $0x1] }
  0x4d   :  { %s189_s9 = vpop.sfrf %188 }
  0x4e   :  { %p228_p4 = scmp.ne.s32.totalorder %s189_s9, 0 }
  0x50   :  { %193 = shalt.err (%p228_p4)  }

</bundles_post_ra>
